<compile_context>
chip_gen: v6e
topology: v6e:2x2x1
jax: 0.10.0
libtpu: 0.0.40
codegen_flags: <defaults>
</compile_context>

<pallas_src>
import jax
import jax.numpy as jnp
from jax.experimental import pallas as pl
from jax.experimental.pallas import tpu as pltpu


def _cdiv(a, b):
    return -(-a // b)


def _round_up(a, b):
    return _cdiv(a, b) * b


def dann_kernel(rep_ref, w_reg_ref, b_reg_ref, w_cls_ref, b_cls_ref,
                out_ref, grp_ref):
    rep = rep_ref[...]                                          # (tile_b, F)

    # Regressor head: one narrow MXU push, stored directly as (tile_b, 1).
    reg = jnp.dot(rep, w_reg_ref[...], preferred_element_type=jnp.float32)
    out_ref[...] = (reg + b_reg_ref[...].astype(jnp.float32)).astype(out_ref.dtype)

    # Classifier head + row-wise log-softmax over the real G lanes only.
    logits = jnp.dot(rep, w_cls_ref[...], preferred_element_type=jnp.float32)
    logits = logits + b_cls_ref[...].astype(jnp.float32)
    m = jnp.max(logits, axis=1, keepdims=True)
    shifted = logits - m
    lse = jnp.log(jnp.sum(jnp.exp(shifted), axis=1, keepdims=True))
    grp_ref[...] = (shifted - lse).astype(grp_ref.dtype)


def _vmem_budget_bytes():
    # Per-generation VMEM budget with headroom: ~32 MiB on v7x (64 MiB/TC),
    # ~48 MiB on v5e/v6e (128 MiB). Conservative fallback if the query fails.
    cap = 64 * 1024 * 1024
    try:
        cap = int(pltpu.get_tpu_info().vmem_capacity_bytes)
    except Exception:
        pass
    return min(cap // 2, 48 * 1024 * 1024)


def _derive_tile_b(B, F, G, itemsize, vmem_budget):
    # Sublane multiple is dtype-aware: (8,128) f32, (16,128) bf16, (32,128) i8.
    mult = max(8, 8 * (4 // max(itemsize, 1)))
    # Resident weights/biases (double-buffer upper bound) come off the budget.
    weight_bytes = 2 * (F + 1) * (1 + G) * 4
    # Per-row VMEM: double-buffered rep tile + double-buffered f32 outputs.
    per_row = 2 * F * itemsize + 2 * (1 + G) * 4
    avail = max(vmem_budget - weight_bytes, 4 * mult * per_row)
    tile = min(avail // per_row, 2048)
    # Keep >= 2 grid tiles at large B so the "parallel" axis can shard across
    # both TensorCores on v7x (near-free on single-TC v5e/v6e).
    tile = min(tile, _round_up(_cdiv(B, 2), mult))
    tile = max((tile // mult) * mult, mult)
    if tile >= B:
        tile = B            # single full block (block dim == array dim is legal)
    return int(tile)


def dann_forward(rep, alpha, w_reg, b_reg, w_cls, b_cls):
    """Pallas forward for DANNModel: returns (output (B,1), group_output (B,G))."""
    del alpha  # ReverseLayerF is identity in the forward pass.
    B, F = rep.shape
    G = w_cls.shape[1]
    b_reg = jnp.asarray(b_reg).reshape(1, 1)
    b_cls = jnp.asarray(b_cls).reshape(1, G)

    vmem_budget = _vmem_budget_bytes()
    tile_b = _derive_tile_b(B, F, G, jnp.dtype(rep.dtype).itemsize, vmem_budget)
    num_tiles = _cdiv(B, tile_b)

    out, grp = pl.pallas_call(
        dann_kernel,
        out_shape=(
            jax.ShapeDtypeStruct((B, 1), jnp.float32),
            jax.ShapeDtypeStruct((B, G), jnp.float32),
        ),
        grid_spec=pltpu.PrefetchScalarGridSpec(
            num_scalar_prefetch=0,
            grid=(num_tiles,),
            in_specs=[
                pl.BlockSpec((tile_b, F), lambda i: (i, 0)),   # rep: batch-tiled
                pl.BlockSpec((F, 1), lambda i: (0, 0)),        # w_reg: resident
                pl.BlockSpec((1, 1), lambda i: (0, 0)),        # b_reg: resident
                pl.BlockSpec((F, G), lambda i: (0, 0)),        # w_cls: resident
                pl.BlockSpec((1, G), lambda i: (0, 0)),        # b_cls: resident
            ],
            out_specs=[
                pl.BlockSpec((tile_b, 1), lambda i: (i, 0)),
                pl.BlockSpec((tile_b, G), lambda i: (i, 0)),
            ],
        ),
        compiler_params=pltpu.CompilerParams(
            dimension_semantics=("parallel",),
            vmem_limit_bytes=int(vmem_budget),
        ),
    )(rep, w_reg, b_reg, w_cls, b_cls)
    return out, grp


def init_params(key, feat_dim, n_groups, dtype=jnp.float32):
    # Deterministic init mimicking nn.Linear's uniform(-1/sqrt(fan_in), ...).
    k1, k2, k3, k4 = jax.random.split(key, 4)
    bound = 1.0 / float(feat_dim) ** 0.5
    w_reg = jax.random.uniform(k1, (feat_dim, 1), dtype, -bound, bound)
    b_reg = jax.random.uniform(k2, (1, 1), dtype, -bound, bound)
    w_cls = jax.random.uniform(k3, (feat_dim, n_groups), dtype, -bound, bound)
    b_cls = jax.random.uniform(k4, (1, n_groups), dtype, -bound, bound)
    return w_reg, b_reg, w_cls, b_cls


if __name__ == "__main__":
    key = jax.random.PRNGKey(0)
    B, FEAT_DIM, N_GROUPS = 8, 32, 4

    k_rep, k_params = jax.random.split(key)
    rep = jax.random.normal(k_rep, (B, FEAT_DIM), dtype=jnp.float32)
    alpha = 0.5  # gradient-reversal coefficient: unused in the forward pass

    w_reg, b_reg, w_cls, b_cls = init_params(k_params, FEAT_DIM, N_GROUPS)

    output, group_output = dann_forward(rep, alpha, w_reg, b_reg, w_cls, b_cls)
    jax.block_until_ready((output, group_output))

    # Pure-JAX reference (all-f32 path, tight tolerances hold).
    ref_out = rep @ w_reg + b_reg
    ref_grp = jax.nn.log_softmax(rep @ w_cls + b_cls, axis=1)
    assert output.shape == (B, 1) and group_output.shape == (B, N_GROUPS)
    assert jnp.allclose(output, ref_out, atol=1e-5, rtol=1e-5)
    assert jnp.allclose(group_output, ref_grp, atol=1e-5, rtol=1e-5)

    print("KERNEL_OK")
</pallas_src>

<mosaic_0001>
module attributes {stable_mosaic.version = 11 : i64} {
  func.func @dann_kernel(%arg0: i32, %arg1: memref<8x32xf32, #tpu.memory_space<vmem>>, %arg2: memref<32x1xf32, #tpu.memory_space<vmem>>, %arg3: memref<1x1xf32, #tpu.memory_space<vmem>>, %arg4: memref<32x4xf32, #tpu.memory_space<vmem>>, %arg5: memref<1x4xf32, #tpu.memory_space<vmem>>, %arg6: memref<8x1xf32, #tpu.memory_space<vmem>>, %arg7: memref<8x4xf32, #tpu.memory_space<vmem>>) attributes {dimension_semantics = [#tpu.dimension_semantics<parallel>], iteration_bounds = array<i64: 1>, scalar_prefetch = 0 : i64, scratch_operands = 0 : i64, tpu.core_type = #tpu.core_type<tc>, window_params = [{transform_indices = @transform_0, window_bounds = array<i64: 8, 32>}, {pipeline_mode = #tpu.pipeline_mode<synchronous>, transform_indices = @transform_1, window_bounds = array<i64: 32, 1>}, {pipeline_mode = #tpu.pipeline_mode<synchronous>, transform_indices = @transform_2, window_bounds = array<i64: 1, 1>}, {pipeline_mode = #tpu.pipeline_mode<synchronous>, transform_indices = @transform_3, window_bounds = array<i64: 32, 4>}, {pipeline_mode = #tpu.pipeline_mode<synchronous>, transform_indices = @transform_4, window_bounds = array<i64: 1, 4>}, {transform_indices = @transform_5, window_bounds = array<i64: 8, 1>}, {transform_indices = @transform_6, window_bounds = array<i64: 8, 4>}]} {
    %c0 = arith.constant 0 : index
    %c0_0 = arith.constant 0 : index
    %0 = vector.load %arg1[%c0, %c0_0] : memref<8x32xf32, #tpu.memory_space<vmem>>, vector<8x32xf32>
    %c0_1 = arith.constant 0 : index
    %c0_2 = arith.constant 0 : index
    %1 = vector.load %arg2[%c0_1, %c0_2] : memref<32x1xf32, #tpu.memory_space<vmem>>, vector<32x1xf32>
    %cst = arith.constant dense<0.000000e+00> : vector<8x1xf32>
    %2 = tpu.matmul %0, %1, %cst {dimension_numbers = #tpu.dot_dimension_numbers<[1], [0], [0], [1], [0, 0, 1, 1], [], []>} : vector<8x32xf32>, vector<32x1xf32>, vector<8x1xf32> -> vector<8x1xf32>
    %c0_3 = arith.constant 0 : index
    %c0_4 = arith.constant 0 : index
    %3 = vector.load %arg3[%c0_3, %c0_4] : memref<1x1xf32, #tpu.memory_space<vmem>>, vector<1x1xf32>
    %4 = vector.broadcast %3 : vector<1x1xf32> to vector<8x1xf32>
    %5 = arith.addf %2, %4 : vector<8x1xf32>
    %c0_5 = arith.constant 0 : index
    %c0_6 = arith.constant 0 : index
    %6 = vector.load %arg6[%c0_5, %c0_6] : memref<8x1xf32, #tpu.memory_space<vmem>>, vector<8x1xf32>
    tpu.vector_store %arg6[%c0_5, %c0_6], %5 {strides = array<i32>} : memref<8x1xf32, #tpu.memory_space<vmem>>, vector<8x1xf32>,
    %c0_7 = arith.constant 0 : index
    %c0_8 = arith.constant 0 : index
    %7 = vector.load %arg4[%c0_7, %c0_8] : memref<32x4xf32, #tpu.memory_space<vmem>>, vector<32x4xf32>
    %cst_9 = arith.constant dense<0.000000e+00> : vector<8x4xf32>
    %8 = tpu.matmul %0, %7, %cst_9 {dimension_numbers = #tpu.dot_dimension_numbers<[1], [0], [0], [1], [0, 0, 1, 1], [], []>} : vector<8x32xf32>, vector<32x4xf32>, vector<8x4xf32> -> vector<8x4xf32>
    %c0_10 = arith.constant 0 : index
    %c0_11 = arith.constant 0 : index
    %9 = vector.load %arg5[%c0_10, %c0_11] : memref<1x4xf32, #tpu.memory_space<vmem>>, vector<1x4xf32>
    %10 = vector.broadcast %9 : vector<1x4xf32> to vector<8x4xf32>
    %11 = arith.addf %8, %10 : vector<8x4xf32>
    %cst_12 = arith.constant dense<0xFF800000> : vector<8xf32>
    %12 = vector.multi_reduction <maximumf>, %11, %cst_12 [1] : vector<8x4xf32> to vector<8xf32>
    %13 = vector.shape_cast %12 : vector<8xf32> to vector<8x1xf32>
    %14 = vector.broadcast %13 : vector<8x1xf32> to vector<8x4xf32>
    %15 = arith.subf %11, %14 : vector<8x4xf32>
    %16 = math.exp %15 : vector<8x4xf32>
    %cst_13 = arith.constant dense<0.000000e+00> : vector<8xf32>
    %17 = vector.multi_reduction <add>, %16, %cst_13 [1] : vector<8x4xf32> to vector<8xf32>
    %18 = vector.shape_cast %17 : vector<8xf32> to vector<8x1xf32>
    %19 = math.log %18 : vector<8x1xf32>
    %20 = vector.broadcast %19 : vector<8x1xf32> to vector<8x4xf32>
    %21 = arith.subf %15, %20 : vector<8x4xf32>
    %c0_14 = arith.constant 0 : index
    %c0_15 = arith.constant 0 : index
    %22 = vector.load %arg7[%c0_14, %c0_15] : memref<8x4xf32, #tpu.memory_space<vmem>>, vector<8x4xf32>
    tpu.vector_store %arg7[%c0_14, %c0_15], %21 {strides = array<i32>} : memref<8x4xf32, #tpu.memory_space<vmem>>, vector<8x4xf32>,
    return
  }
  func.func @transform_0(%arg0: i32) -> (i32, i32) {
    %c0_i32 = arith.constant 0 : i32
    %c0_i32_0 = arith.constant 0 : i32
    return %arg0, %c0_i32 : i32, i32
  }
  func.func @transform_1(%arg0: i32) -> (i32, i32) {
    %c0_i32 = arith.constant 0 : i32
    %c0_i32_0 = arith.constant 0 : i32
    %c0_i32_1 = arith.constant 0 : i32
    return %c0_i32, %c0_i32_0 : i32, i32
  }
  func.func @transform_2(%arg0: i32) -> (i32, i32) {
    %c0_i32 = arith.constant 0 : i32
    %c0_i32_0 = arith.constant 0 : i32
    %c0_i32_1 = arith.constant 0 : i32
    return %c0_i32, %c0_i32_0 : i32, i32
  }
  func.func @transform_3(%arg0: i32) -> (i32, i32) {
    %c0_i32 = arith.constant 0 : i32
    %c0_i32_0 = arith.constant 0 : i32
    %c0_i32_1 = arith.constant 0 : i32
    return %c0_i32, %c0_i32_0 : i32, i32
  }
  func.func @transform_4(%arg0: i32) -> (i32, i32) {
    %c0_i32 = arith.constant 0 : i32
    %c0_i32_0 = arith.constant 0 : i32
    %c0_i32_1 = arith.constant 0 : i32
    return %c0_i32, %c0_i32_0 : i32, i32
  }
  func.func @transform_5(%arg0: i32) -> (i32, i32) {
    %c0_i32 = arith.constant 0 : i32
    %c0_i32_0 = arith.constant 0 : i32
    return %arg0, %c0_i32 : i32, i32
  }
  func.func @transform_6(%arg0: i32) -> (i32, i32) {
    %c0_i32 = arith.constant 0 : i32
    %c0_i32_0 = arith.constant 0 : i32
    return %arg0, %c0_i32 : i32, i32
  }
}

</mosaic_0001>

<bundles_post_ra>
// kernel: tpu_custom_call.1
= control target key start
LH: loop header
LB: loop body
LE: loop exit
PB: predicated region body
PF: predicated region fallthrough
CT: control target
= control target key end

     0   :  { %v257_v0 = vmov 0.0   ;;  %vm258_vm0 = vmmov 0   ;;  %vm36_vm1 = vcmask 261120   ;;  %vm193_vm2 = vcmask 31744   ;;  %s338_s3 = inlined_call_operand.vmem [shape: f32[32,4], index: 3, kind: input, shape index: {}]   ;;  %s339_s0 = inlined_call_operand.vmem [shape: f32[8,32], index: 0, kind: input, shape index: {}]   ;;  %s340_s1 = inlined_call_operand.vmem [shape: f32[32,1], index: 1, kind: input, shape index: {}]   ;;  %s341_s4 = inlined_call_operand.vmem [shape: f32[1,4], index: 4, kind: input, shape index: {}]   ;;  %s342_s2 = inlined_call_operand.<no memory space> [shape: f32[1,1], index: 2, kind: input, shape index: {}]   ;;  %s343_s5 = inlined_call_operand.vmem [shape: f32[8,1], index: 5, kind: output, shape index: {0}]   ;;  %s344_s6 = inlined_call_operand.vmem [shape: f32[8,4], index: 6, kind: output, shape index: {1}]  }
   0x1   :  { %240 = vmatprep.subr.mxu1 %v257_v0  ;;  %v115_v1 = vld [vmem:[%s338_s3 + $0x18] sm:$0xff]  ;;  %v114_v2 = vld [vmem:[%s338_s3 + $0x10] sm:$0xff]  ;;  %248 = vmatprep.mubr.msk.f32.mxu1 %vm258_vm0, %v257_v0  ;;  %v113_v3 = vld [vmem:[%s338_s3 + $0x8] sm:$0xff]  ;;  %v12_v20 = vstv %s342_s2  ;;  %vm110_vm3 = vcmask 7168  }
   0x2   :  { %241 = vmatpush3.msra.mxu1 %v115_v1  ;;  %229 = vmatprep.subr.mxu0 %v257_v0  ;;  %v112_v4 = vld [vmem:[%s338_s3] sm:$0xff]  ;;  %v28_v6 = vld [vmem:[%s340_s1 + $0x18] sm:$0xff]  ;;  %v27_v7 = vld [vmem:[%s340_s1 + $0x10] sm:$0xff]  ;;  %13 = vst [vmem:[#allocation2] sm:$0x1] %v12_v20 }
   0x3   :  { %242 = vmatprep.subr.mxu1 %v257_v0  ;;  %237 = vmatprep.mubr.msk.f32.mxu0 %vm258_vm0, %v257_v0  ;;  %v24_v5 = vld [vmem:[%s339_s0] sm:$0xff]  ;;  %v26_v8 = vld [vmem:[%s340_s1 + $0x8] sm:$0xff] }
   0x4   :  { %243 = vmatpush3.msra.mxu1 %v114_v2  ;;  %230 = vmatpush3.msra.mxu0 %v28_v6  ;;  %v25_v9 = vld [vmem:[%s340_s1] sm:$0xff] }
   0x5   :  { %244 = vmatprep.subr.mxu1 %v257_v0  ;;  %231 = vmatprep.subr.mxu0 %v257_v0  ;;  %v217_v10 = vld [vmem:[%s341_s4] ss:$0 sm:$0xff] }
   0x6   :  { %245 = vmatpush3.msra.mxu1 %v113_v3  ;;  %232 = vmatpush3.msra.mxu0 %v27_v7 }
   0x7   :  { %246 = vmatprep.subr.mxu1 %v257_v0  ;;  %233 = vmatprep.subr.mxu0 %v257_v0 }
   0x8   :  { %247 = vmatpush3.msra.mxu1 %v112_v4  ;;  %234 = vmatpush3.msra.mxu0 %v26_v8 }
   0x9   :  { %249 = vmatmul.mubr.msk.f32.vlgmr.msra.gmra.mxu1 %vm36_vm1, %v24_v5  ;;  %235 = vmatprep.subr.mxu0 %v257_v0  ;;  %v215_v22 = vld [vmem:[#allocation2] ss:$0 sm:$0xff] }
   0xa   :  { %236 = vmatpush3.msra.mxu0 %v25_v9 }
   0xb   :  { %238 = vmatmul.mubr.msk.f32.vlgmr.msra.gmra.mxu0 %vm36_vm1, %v24_v5 }
  0xc9   :  { %v189_v11 = vpop.f32.mrf.mxu1 }
  0xca   :  { %v190_v12 = vadd.f32 %v217_v10, %v189_v11 }
  0xcb   :  { %v250_v13 = vpop.f32.mrf.mxu1  ;;  %v106_v21 = vpop.f32.mrf.mxu0 }
  0xcc   :  { %v194_v14 = vsel %vm193_vm2, %v190_v12, -inf  ;;  %v107_v24 = vadd.f32 %v215_v22, %v106_v21 }
  0xcd   :  { %195 = vmax.xlane.f32.xlu0 %v194_v14  ;;  %v239_v23 = vpop.f32.mrf.mxu0 }
  0xce   :  { %111 = vst.msk [vmem:[%s343_s5] sm:$0xff] %vm110_vm3, %v107_v24 }
 0x156   :  { %v196_v15 = vpop.xlane.xlu0 %195 }
 0x157   :  { %v197_v16 = vsub.f32 %v190_v12, %v196_v15 }
 0x159   :  { %v198_v17 = vmul.f32 1.442695, %v197_v16 }
 0x15b   :  { %253 = vpow2.f32 %v198_v17 }
 0x168   :  { %v254_v18 = vpop.eup %253 }
 0x169   :  { %v200_v19 = vsel %vm193_vm2, %v254_v18, 0.0 }
 0x16a   :  { %201 = vadd.xlane.f32.xlu0 %v200_v19 }
 0x1f3   :  { %v202_v25 = vpop.xlane.xlu0 %201 }
 0x1f4   :  { %255 = vlog2.f32 %v202_v25 }
 0x201   :  { %v256_v26 = vpop.eup %255 }
 0x202   :  { %v204_v27 = vmul.f32 0.6931472, %v256_v26 }
 0x204   :  { %v205_v28 = vsub.f32 %v197_v16, %v204_v27 }
 0x206   :  { %206 = vst.msk [vmem:[%s344_s6] sm:$0xff] %vm193_vm2, %v205_v28 }

</bundles_post_ra>
